<compile_context>
chip_gen: v7x
topology: tpu7x:2x2x1
jax: 0.10.0
libtpu: 0.0.40
codegen_flags: <defaults>
</compile_context>

<pallas_src>
import functools

import jax
import jax.numpy as jnp
from jax import lax
from jax.experimental import pallas as pl
from jax.experimental.pallas import tpu as pltpu


def _cdiv(a, b):
    return -(-a // b)


def _round_up(x, m):
    return ((x + m - 1) // m) * m


def _custom_loss_kernel(yp_ref, yt_ref, out_ref, acc_sq, acc_num, acc_den, *,
                        tau, blk_rows, blocks_per_split, n_elems, needs_mask):
    i = pl.program_id(0)  # split index ("parallel"; sharded across cores on v7x)
    j = pl.program_id(1)  # row-block index within split ("arbitrary" reduction)

    @pl.when(j == 0)
    def _init():
        acc_sq[...] = jnp.zeros_like(acc_sq)
        acc_num[...] = jnp.zeros_like(acc_num)
        acc_den[...] = jnp.zeros_like(acc_den)

    # Load in native dtype, upcast in-register (halves HBM traffic for bf16 inputs).
    yp = yp_ref[...].astype(jnp.float32)
    yt = yt_ref[...].astype(jnp.float32)

    diff = yt - yp
    sq = diff * diff
    abs_diff = jnp.abs(diff)
    peaks = jnp.maximum(jnp.abs(yt) - tau, 0.0)

    if needs_mask:
        # Tail masking: zero out contributions from host-side zero padding so the
        # kernel is correct for any N (and any tau, including tau <= 0).
        row = lax.broadcasted_iota(jnp.int32, (blk_rows, 128), 0)
        lane = lax.broadcasted_iota(jnp.int32, (blk_rows, 128), 1)
        gid = ((i * blocks_per_split + j) * blk_rows + row) * 128 + lane
        valid = gid < n_elems
        sq = jnp.where(valid, sq, 0.0)
        peaks = jnp.where(valid, peaks, 0.0)

    # Deferred reduction: fold (blk_rows, 128) onto vreg-shaped (8, 128)
    # accumulators with pure VALU adds (no per-step XLU tree reduce); this also
    # behaves like chunked summation, improving f32 accumulation accuracy.
    r8 = blk_rows // 8
    acc_sq[...] += jnp.sum(sq.reshape(r8, 8, 128), axis=0)
    acc_num[...] += jnp.sum((peaks * abs_diff).reshape(r8, 8, 128), axis=0)
    acc_den[...] += jnp.sum(peaks.reshape(r8, 8, 128), axis=0)

    # Finalize: single XLU reduce per accumulator, only on the last grid step.
    @pl.when(j == pl.num_programs(1) - 1)
    def _finalize():
        sum_sq = jnp.sum(acc_sq[...])
        reg_num = jnp.sum(acc_num[...])
        reg_den = jnp.sum(acc_den[...])
        sub = lax.broadcasted_iota(jnp.int32, (1, 8, 128), 1)
        lane = lax.broadcasted_iota(jnp.int32, (1, 8, 128), 2)
        packed = jnp.where(
            (sub == 0) & (lane == 0), sum_sq,
            jnp.where(
                (sub == 0) & (lane == 1), reg_num,
                jnp.where((sub == 0) & (lane == 2), reg_den, jnp.float32(0.0))))
        out_ref[...] = packed


def custom_loss(y_pred, y_true, lambda_reg=0.1, tau=0.1, eta=1e-8,
                block_rows=4096, num_splits=2):
    """Pallas TPU implementation of CustomLoss.forward for 1-D inputs (N,)."""
    assert y_pred.shape == y_true.shape, "y_pred and y_true must have the same shape"
    assert y_pred.ndim == 1
    n = y_pred.shape[0]

    # Tiling: rows of 128 lanes; per-split blocks of blk rows (multiple of 8).
    rows_needed = _cdiv(n, 128)
    blk = min(block_rows, _round_up(max(_cdiv(rows_needed, num_splits), 1), 8))
    blk = max(8, _round_up(blk, 8))
    bps = max(1, _cdiv(rows_needed, num_splits * blk))  # blocks per split
    total_rows = num_splits * bps * blk
    padded_len = total_rows * 128
    needs_mask = padded_len != n

    def _prep(x):
        x = x.reshape(-1)                     # keep native dtype (no host upcast)
        if padded_len != n:
            x = jnp.pad(x, (0, padded_len - n))
        return x.reshape(total_rows, 128)     # lane-dense (sublane x lane) slab

    yp2 = _prep(y_pred)
    yt2 = _prep(y_true)

    kernel = functools.partial(
        _custom_loss_kernel,
        tau=float(tau),
        blk_rows=blk,
        blocks_per_split=bps,
        n_elems=n,
        needs_mask=needs_mask,
    )

    partials = pl.pallas_call(
        kernel,
        out_shape=jax.ShapeDtypeStruct((num_splits, 8, 128), jnp.float32),
        grid_spec=pltpu.PrefetchScalarGridSpec(
            num_scalar_prefetch=0,
            grid=(num_splits, bps),
            in_specs=[
                pl.BlockSpec((blk, 128), lambda i, j: (i * bps + j, 0)),
                pl.BlockSpec((blk, 128), lambda i, j: (i * bps + j, 0)),
            ],
            out_specs=pl.BlockSpec((1, 8, 128), lambda i, j: (i, 0, 0)),
            scratch_shapes=[
                pltpu.VMEM((8, 128), jnp.float32),  # running sum of squares
                pltpu.VMEM((8, 128), jnp.float32),  # running sum(peaks * |diff|)
                pltpu.VMEM((8, 128), jnp.float32),  # running sum(peaks)
            ],
        ),
        compiler_params=pltpu.CompilerParams(
            dimension_semantics=("parallel", "arbitrary"),
        ),
    )(yp2, yt2)

    # Tiny scalar epilogue: merge per-split partials and apply divisions / eta.
    sum_sq = jnp.sum(partials[:, 0, 0])
    reg_num = jnp.sum(partials[:, 0, 1])
    reg_den = jnp.sum(partials[:, 0, 2]) + jnp.float32(eta)
    n_f = jnp.float32(n)
    mse = sum_sq / n_f
    reg_term = (jnp.float32(lambda_reg) / n_f) * (reg_num / reg_den)
    return mse + reg_term


def _reference_loss(y_pred, y_true, lambda_reg=0.1, tau=0.1, eta=1e-8):
    y_pred = y_pred.astype(jnp.float32)
    y_true = y_true.astype(jnp.float32)
    mse = jnp.mean((y_pred - y_true) ** 2)
    abs_diff = jnp.abs(y_true - y_pred)
    relu_peaks = jnp.maximum(jnp.abs(y_true) - tau, 0.0)
    reg = (lambda_reg / y_true.shape[0]) * (
        jnp.sum(relu_peaks * abs_diff) / (jnp.sum(relu_peaks) + eta)
    )
    return mse + reg


if __name__ == "__main__":
    key = jax.random.PRNGKey(0)
    k1, k2 = jax.random.split(key)
    # Small 1-D inputs; deliberately not a multiple of 128 to exercise tail masking.
    N = 1000
    y_pred = jax.random.normal(k1, (N,), dtype=jnp.float32)
    y_true = jax.random.normal(k2, (N,), dtype=jnp.float32)

    loss = custom_loss(y_pred, y_true)
    jax.block_until_ready(loss)

    ref = _reference_loss(y_pred, y_true)
    assert jnp.allclose(loss, ref, rtol=1e-5, atol=1e-6), (loss, ref)

    print("KERNEL_OK")
</pallas_src>

<mosaic_0001>
module attributes {stable_mosaic.version = 11 : i64} {
  func.func @_custom_loss_kernel(%arg0: i32, %arg1: i32, %arg2: memref<8x128xf32, #tpu.memory_space<vmem>>, %arg3: memref<8x128xf32, #tpu.memory_space<vmem>>, %arg4: memref<1x8x128xf32, #tpu.memory_space<vmem>>, %arg5: memref<8x128xf32, #tpu.memory_space<vmem>>, %arg6: memref<8x128xf32, #tpu.memory_space<vmem>>, %arg7: memref<8x128xf32, #tpu.memory_space<vmem>>) attributes {dimension_semantics = [#tpu.dimension_semantics<parallel>, #tpu.dimension_semantics<arbitrary>], iteration_bounds = array<i64: 2, 1>, scalar_prefetch = 0 : i64, scratch_operands = 3 : i64, tpu.core_type = #tpu.core_type<tc>, window_params = [{transform_indices = @transform_0, window_bounds = array<i64: 8, 128>}, {transform_indices = @transform_1, window_bounds = array<i64: 8, 128>}, {transform_indices = @transform_2, window_bounds = array<i64: 1, 8, 128>}]} {
    %c0_i32 = arith.constant 0 : i32
    %0 = arith.cmpi eq, %arg1, %c0_i32 : i32
    %1 = arith.extui %0 : i1 to i32
    %c0_i32_0 = arith.constant 0 : i32
    %2 = arith.cmpi ne, %1, %c0_i32_0 : i32
    scf.if %2 {
      %cst_24 = arith.constant 0.000000e+00 : f32
      %48 = vector.broadcast %cst_24 : f32 to vector<8x128xf32>
      %c0_25 = arith.constant 0 : index
      %c0_26 = arith.constant 0 : index
      %49 = vector.load %arg5[%c0_25, %c0_26] : memref<8x128xf32, #tpu.memory_space<vmem>>, vector<8x128xf32>
      tpu.vector_store %arg5[%c0_25, %c0_26], %48 {strides = array<i32>} : memref<8x128xf32, #tpu.memory_space<vmem>>, vector<8x128xf32>,
      %cst_27 = arith.constant 0.000000e+00 : f32
      %50 = vector.broadcast %cst_27 : f32 to vector<8x128xf32>
      %c0_28 = arith.constant 0 : index
      %c0_29 = arith.constant 0 : index
      %51 = vector.load %arg6[%c0_28, %c0_29] : memref<8x128xf32, #tpu.memory_space<vmem>>, vector<8x128xf32>
      tpu.vector_store %arg6[%c0_28, %c0_29], %50 {strides = array<i32>} : memref<8x128xf32, #tpu.memory_space<vmem>>, vector<8x128xf32>,
      %cst_30 = arith.constant 0.000000e+00 : f32
      %52 = vector.broadcast %cst_30 : f32 to vector<8x128xf32>
      %c0_31 = arith.constant 0 : index
      %c0_32 = arith.constant 0 : index
      %53 = vector.load %arg7[%c0_31, %c0_32] : memref<8x128xf32, #tpu.memory_space<vmem>>, vector<8x128xf32>
      tpu.vector_store %arg7[%c0_31, %c0_32], %52 {strides = array<i32>} : memref<8x128xf32, #tpu.memory_space<vmem>>, vector<8x128xf32>,
    } else {
    }
    %c0 = arith.constant 0 : index
    %c0_1 = arith.constant 0 : index
    %3 = vector.load %arg2[%c0, %c0_1] : memref<8x128xf32, #tpu.memory_space<vmem>>, vector<8x128xf32>
    %c0_2 = arith.constant 0 : index
    %c0_3 = arith.constant 0 : index
    %4 = vector.load %arg3[%c0_2, %c0_3] : memref<8x128xf32, #tpu.memory_space<vmem>>, vector<8x128xf32>
    %5 = arith.subf %4, %3 : vector<8x128xf32>
    %6 = arith.mulf %5, %5 : vector<8x128xf32>
    %7 = math.absf %5 : vector<8x128xf32>
    %8 = math.absf %4 : vector<8x128xf32>
    %cst = arith.constant 1.000000e-01 : f32
    %9 = vector.broadcast %cst : f32 to vector<8x128xf32>
    %10 = arith.subf %8, %9 : vector<8x128xf32>
    %cst_4 = arith.constant 0.000000e+00 : f32
    %11 = vector.broadcast %cst_4 : f32 to vector<8x128xf32>
    %12 = arith.maximumf %10, %11 : vector<8x128xf32>
    %13 = tpu.iota {dimensions = array<i32: 0>} : vector<8x128xi32>
    %14 = tpu.iota {dimensions = array<i32: 1>} : vector<8x128xi32>
    %c1_i32 = arith.constant 1 : i32
    %15 = arith.muli %arg0, %c1_i32 : i32
    %16 = arith.addi %15, %arg1 : i32
    %c8_i32 = arith.constant 8 : i32
    %17 = arith.muli %16, %c8_i32 : i32
    %18 = vector.broadcast %17 : i32 to vector<8x128xi32>
    %19 = arith.addi %18, %13 : vector<8x128xi32>
    %c128_i32 = arith.constant 128 : i32
    %20 = vector.broadcast %c128_i32 : i32 to vector<8x128xi32>
    %21 = arith.muli %19, %20 : vector<8x128xi32>
    %22 = arith.addi %21, %14 : vector<8x128xi32>
    %c1000_i32 = arith.constant 1000 : i32
    %23 = vector.broadcast %c1000_i32 : i32 to vector<8x128xi32>
    %24 = arith.cmpi slt, %22, %23 : vector<8x128xi32>
    %cst_5 = arith.constant 0.000000e+00 : f32
    %25 = vector.broadcast %cst_5 : f32 to vector<8x128xf32>
    %26 = arith.select %24, %6, %25 : vector<8x128xi1>, vector<8x128xf32>
    %cst_6 = arith.constant 0.000000e+00 : f32
    %27 = vector.broadcast %cst_6 : f32 to vector<8x128xf32>
    %28 = arith.select %24, %12, %27 : vector<8x128xi1>, vector<8x128xf32>
    %c0_7 = arith.constant 0 : index
    %c0_8 = arith.constant 0 : index
    %29 = vector.load %arg5[%c0_7, %c0_8] : memref<8x128xf32, #tpu.memory_space<vmem>>, vector<8x128xf32>
    %30 = vector.shape_cast %26 : vector<8x128xf32> to vector<1x8x128xf32>
    %cst_9 = arith.constant dense<0.000000e+00> : vector<8x128xf32>
    %31 = vector.multi_reduction <add>, %30, %cst_9 [0] : vector<1x8x128xf32> to vector<8x128xf32>
    %32 = arith.addf %29, %31 : vector<8x128xf32>
    %c0_10 = arith.constant 0 : index
    %c0_11 = arith.constant 0 : index
    %33 = vector.load %arg5[%c0_10, %c0_11] : memref<8x128xf32, #tpu.memory_space<vmem>>, vector<8x128xf32>
    tpu.vector_store %arg5[%c0_10, %c0_11], %32 {strides = array<i32>} : memref<8x128xf32, #tpu.memory_space<vmem>>, vector<8x128xf32>,
    %c0_12 = arith.constant 0 : index
    %c0_13 = arith.constant 0 : index
    %34 = vector.load %arg6[%c0_12, %c0_13] : memref<8x128xf32, #tpu.memory_space<vmem>>, vector<8x128xf32>
    %35 = arith.mulf %28, %7 : vector<8x128xf32>
    %36 = vector.shape_cast %35 : vector<8x128xf32> to vector<1x8x128xf32>
    %cst_14 = arith.constant dense<0.000000e+00> : vector<8x128xf32>
    %37 = vector.multi_reduction <add>, %36, %cst_14 [0] : vector<1x8x128xf32> to vector<8x128xf32>
    %38 = arith.addf %34, %37 : vector<8x128xf32>
    %c0_15 = arith.constant 0 : index
    %c0_16 = arith.constant 0 : index
    %39 = vector.load %arg6[%c0_15, %c0_16] : memref<8x128xf32, #tpu.memory_space<vmem>>, vector<8x128xf32>
    tpu.vector_store %arg6[%c0_15, %c0_16], %38 {strides = array<i32>} : memref<8x128xf32, #tpu.memory_space<vmem>>, vector<8x128xf32>,
    %c0_17 = arith.constant 0 : index
    %c0_18 = arith.constant 0 : index
    %40 = vector.load %arg7[%c0_17, %c0_18] : memref<8x128xf32, #tpu.memory_space<vmem>>, vector<8x128xf32>
    %41 = vector.shape_cast %28 : vector<8x128xf32> to vector<1x8x128xf32>
    %cst_19 = arith.constant dense<0.000000e+00> : vector<8x128xf32>
    %42 = vector.multi_reduction <add>, %41, %cst_19 [0] : vector<1x8x128xf32> to vector<8x128xf32>
    %43 = arith.addf %40, %42 : vector<8x128xf32>
    %c0_20 = arith.constant 0 : index
    %c0_21 = arith.constant 0 : index
    %44 = vector.load %arg7[%c0_20, %c0_21] : memref<8x128xf32, #tpu.memory_space<vmem>>, vector<8x128xf32>
    tpu.vector_store %arg7[%c0_20, %c0_21], %43 {strides = array<i32>} : memref<8x128xf32, #tpu.memory_space<vmem>>, vector<8x128xf32>,
    %c0_i32_22 = arith.constant 0 : i32
    %45 = arith.cmpi eq, %arg1, %c0_i32_22 : i32
    %46 = arith.extui %45 : i1 to i32
    %c0_i32_23 = arith.constant 0 : i32
    %47 = arith.cmpi ne, %46, %c0_i32_23 : i32
    scf.if %47 {
      %c0_24 = arith.constant 0 : index
      %c0_25 = arith.constant 0 : index
      %48 = vector.load %arg5[%c0_24, %c0_25] : memref<8x128xf32, #tpu.memory_space<vmem>>, vector<8x128xf32>
      %49 = vector.shape_cast %48 : vector<8x128xf32> to vector<1x8x128xf32>
      %cst_26 = arith.constant dense<0.000000e+00> : vector<1xf32>
      %50 = vector.multi_reduction <add>, %49, %cst_26 [1, 2] : vector<1x8x128xf32> to vector<1xf32>
      %51 = vector.shape_cast %50 : vector<1xf32> to vector<1x1x1xf32>
      %52 = vector.extract %51[0, 0, 0] : f32 from vector<1x1x1xf32>
      %c0_27 = arith.constant 0 : index
      %c0_28 = arith.constant 0 : index
      %53 = vector.load %arg6[%c0_27, %c0_28] : memref<8x128xf32, #tpu.memory_space<vmem>>, vector<8x128xf32>
      %54 = vector.shape_cast %53 : vector<8x128xf32> to vector<1x8x128xf32>
      %cst_29 = arith.constant dense<0.000000e+00> : vector<1xf32>
      %55 = vector.multi_reduction <add>, %54, %cst_29 [1, 2] : vector<1x8x128xf32> to vector<1xf32>
      %56 = vector.shape_cast %55 : vector<1xf32> to vector<1x1x1xf32>
      %57 = vector.extract %56[0, 0, 0] : f32 from vector<1x1x1xf32>
      %c0_30 = arith.constant 0 : index
      %c0_31 = arith.constant 0 : index
      %58 = vector.load %arg7[%c0_30, %c0_31] : memref<8x128xf32, #tpu.memory_space<vmem>>, vector<8x128xf32>
      %59 = vector.shape_cast %58 : vector<8x128xf32> to vector<1x8x128xf32>
      %cst_32 = arith.constant dense<0.000000e+00> : vector<1xf32>
      %60 = vector.multi_reduction <add>, %59, %cst_32 [1, 2] : vector<1x8x128xf32> to vector<1xf32>
      %61 = vector.shape_cast %60 : vector<1xf32> to vector<1x1x1xf32>
      %62 = vector.extract %61[0, 0, 0] : f32 from vector<1x1x1xf32>
      %63 = tpu.iota {dimensions = array<i32: 1>} : vector<1x8x128xi32>
      %64 = tpu.iota {dimensions = array<i32: 2>} : vector<1x8x128xi32>
      %c0_i32_33 = arith.constant 0 : i32
      %65 = vector.broadcast %c0_i32_33 : i32 to vector<1x8x128xi32>
      %66 = arith.cmpi eq, %63, %65 : vector<1x8x128xi32>
      %c0_i32_34 = arith.constant 0 : i32
      %67 = vector.broadcast %c0_i32_34 : i32 to vector<1x8x128xi32>
      %68 = arith.cmpi eq, %64, %67 : vector<1x8x128xi32>
      %69 = arith.andi %66, %68 : vector<1x8x128xi1>
      %c0_i32_35 = arith.constant 0 : i32
      %70 = vector.broadcast %c0_i32_35 : i32 to vector<1x8x128xi32>
      %71 = arith.cmpi eq, %63, %70 : vector<1x8x128xi32>
      %c1_i32_36 = arith.constant 1 : i32
      %72 = vector.broadcast %c1_i32_36 : i32 to vector<1x8x128xi32>
      %73 = arith.cmpi eq, %64, %72 : vector<1x8x128xi32>
      %74 = arith.andi %71, %73 : vector<1x8x128xi1>
      %c0_i32_37 = arith.constant 0 : i32
      %75 = vector.broadcast %c0_i32_37 : i32 to vector<1x8x128xi32>
      %76 = arith.cmpi eq, %63, %75 : vector<1x8x128xi32>
      %c2_i32 = arith.constant 2 : i32
      %77 = vector.broadcast %c2_i32 : i32 to vector<1x8x128xi32>
      %78 = arith.cmpi eq, %64, %77 : vector<1x8x128xi32>
      %79 = arith.andi %76, %78 : vector<1x8x128xi1>
      %cst_38 = arith.constant 0.000000e+00 : f32
      %80 = vector.broadcast %62 : f32 to vector<1x8x128xf32>
      %81 = vector.broadcast %cst_38 : f32 to vector<1x8x128xf32>
      %82 = arith.select %79, %80, %81 : vector<1x8x128xi1>, vector<1x8x128xf32>
      %83 = vector.broadcast %57 : f32 to vector<1x8x128xf32>
      %84 = arith.select %74, %83, %82 : vector<1x8x128xi1>, vector<1x8x128xf32>
      %85 = vector.broadcast %52 : f32 to vector<1x8x128xf32>
      %86 = arith.select %69, %85, %84 : vector<1x8x128xi1>, vector<1x8x128xf32>
      %c0_39 = arith.constant 0 : index
      %c0_40 = arith.constant 0 : index
      %c0_41 = arith.constant 0 : index
      %87 = vector.load %arg4[%c0_39, %c0_40, %c0_41] : memref<1x8x128xf32, #tpu.memory_space<vmem>>, vector<1x8x128xf32>
      tpu.vector_store %arg4[%c0_39, %c0_40, %c0_41], %86 {strides = array<i32>} : memref<1x8x128xf32, #tpu.memory_space<vmem>>, vector<1x8x128xf32>,
    } else {
    }
    return
  }
  func.func @transform_0(%arg0: i32, %arg1: i32) -> (i32, i32) {
    %c1_i32 = arith.constant 1 : i32
    %0 = arith.muli %arg0, %c1_i32 : i32
    %1 = arith.addi %0, %arg1 : i32
    %c0_i32 = arith.constant 0 : i32
    %c0_i32_0 = arith.constant 0 : i32
    return %1, %c0_i32 : i32, i32
  }
  func.func @transform_1(%arg0: i32, %arg1: i32) -> (i32, i32) {
    %c1_i32 = arith.constant 1 : i32
    %0 = arith.muli %arg0, %c1_i32 : i32
    %1 = arith.addi %0, %arg1 : i32
    %c0_i32 = arith.constant 0 : i32
    %c0_i32_0 = arith.constant 0 : i32
    return %1, %c0_i32 : i32, i32
  }
  func.func @transform_2(%arg0: i32, %arg1: i32) -> (i32, i32, i32) {
    %c0_i32 = arith.constant 0 : i32
    %c0_i32_0 = arith.constant 0 : i32
    %c0_i32_1 = arith.constant 0 : i32
    return %arg0, %c0_i32, %c0_i32_0 : i32, i32, i32
  }
}

</mosaic_0001>

<bundles_post_ra>
// kernel: tpu_custom_call.1
= control target key start
LH: loop header
LB: loop body
LE: loop exit
PB: predicated region body
PF: predicated region fallthrough
CT: control target
= control target key end

     0   :  { %7 = vsyncpa [#allocation6], 0  ;;  %s904_s0 = inlined_call_operand.hbm [shape: f32[16,128], index: 0, kind: input, shape index: {}]   ;;  %s905_s1 = inlined_call_operand.hbm [shape: f32[16,128], index: 1, kind: input, shape index: {}]   ;;  %s906_s2 = inlined_call_operand.hbm [shape: f32[2,8,128], index: 2, kind: output, shape index: {}]  }
   0x1   :  { %9 = vsyncpa [#allocation6 + $0x1], 0 }
   0x2   :  { %10 = vsyncpa [#allocation9], 0 }
   0x3   :  { %12 = vsyncpa [#allocation9 + $0x1], 0 }
   0x4   :  { %13 = vsyncpa [#allocation7], 0 }
   0x5   :  { %15 = vsyncpa [#allocation7 + $0x1], 0  ;;  %s678_s9 = smov 0   ;;  %s680_s10 = smov 0  }
   0x6   :  { %s682_s11 = smov 0   ;;  %s684_s12 = smov 0  }
   0x7   :  { %s686_s13 = smov 0   ;;  %s688_s14 = smov 0  }
   0x8 LB: > { %s421_s15 = sadd.s32 4294967295, %s658_s14   ;;  %s422_s16 = sadd.s32 4294967294, %s658_s14   ;;  %s658_s14 = sphi %s688_s14, %s21_s14   ;;  %s654_s13 = sphi %s686_s13, %s926_s13   ;;  %s650_s12 = sphi %s684_s12, %s925_s12   ;;  %s646_s11 = sphi %s682_s11, %s924_s11   ;;  %s642_s10 = sphi %s680_s10, %s923_s10   ;;  %s638_s9 = sphi %s678_s9, %s922_s9  }
   0x9   : > { %s33_s17 = sadd.s32 1, %s654_s13  ;;  %s42_s18 = sadd.s32 1, %s646_s11 }
   0xa   : > { %p35_p0 = scmp.ge.s32.totalorder %s33_s17, 2  ;;  %p49_p1 = scmp.ne.s32.totalorder %s646_s11, %s642_s10 }
   0xb   : > { %p50_p2 = scmp.eq.s32.totalorder %s658_s14, 0  ;;  %p55_p3 = scmp.ne.s32.totalorder %s642_s10, %s638_s9 }
   0xc   : > { %s928_s17 = smov (%p35_p0, %s33_s17), 0  ;;  %p56_p5 = scmp.eq.s32.totalorder %s421_s15, 0 }
   0xd   : > { %p719_p4 = por %p50_p2, %p49_p1  ;;  %s39_s20 = ssub.s32 %s654_s13, %s928_s17 }
   0xe   : > { %p107_p6 = scmp.eq.s32.totalorder %s421_s15, 1  ;;  %p40_p7 = scmp.eq.s32.totalorder %s39_s20, 0 }
   0xf   : > { %p725_p8 = por %p56_p5, %p55_p3  ;;  %p113_p10 = scmp.eq.s32.totalorder %s422_s16, 1 }
  0x10   : > { %p729_p9 = por %p107_p6, %p49_p1  ;;  %p462_p13 = scmp.lt.s32.totalorder %s658_s14, 2 }
  0x11   : > { %s910_s21 = scalar_select %p725_p8, 1, 0 }
  0x12   : > { %s911_s22 = scalar_select %p729_p9, 1, 0 }
  0x13   : > { %s734_s23 = scalar_select %p40_p7, %s646_s11, %s42_s18  }
  0x14   : > { %p736_p11 = por %p113_p10, %p55_p3  ;;  %s743_s25 = sand.u32 1, %s646_s11  }
  0x15   : > { %s425_s26 = sshll.u32 %s743_s25, 3  ;;  %s426_s27 = sshll.u32 %s654_s13, 7 }
  0x16   : > { %s912_s24 = scalar_select %p736_p11, 1, 0 }
  0x17   : > { %s752_s30 = scalar_lea.hbm %s904_s0, %s426_s27  ;;  %s137_s3 = scalar_lea.vmem [#allocation5], %s425_s26 }
  0x18   : > { %s145_s4 = sshll.u32 %s137_s3, 4  ;;  %p760_p0 = pnand %p462_p13, %p719_p4  ;;  %s756_s4 = int_to_ptr.vmem [resolvable:$true] %s145_s4 }
  0x19   : > { %s134_s6 = scalar_lea.sflag [#allocation6], %s743_s25  ;;  %s512_s7 = scalar_lea.hbm %s752_s30, 128 }
  0x1a   : > { %p513_p3 = scmp.ne.s32.totalorder %s752_s30, %s512_s7  ;;  %p514_p5 = pneg %p760_p0 }
  0x1b   : > { %s517_s16 = scalar_lea.hbm %s904_s0, 256  ;;  %p518_p4 = scmp.lt.u32.totalorder %s752_s30, %s904_s0 }
  0x1c   : > { %p515_p6 = pnand %p514_p5, %p513_p3  ;;  %p519_p10 = scmp.lt.u32.totalorder %s517_s16, %s512_s7 }
  0x1d   : > { %p521_p12 = scmp.lt.u32.totalorder %s512_s7, %s752_s30 }
  0x1e   : > { %p516_p7 = pneg %p515_p6  ;;  %p520_p13 = por %p519_p10, %p518_p4 }
  0x20   : > { %p522_p1 = por %p521_p12, %p520_p13 }
  0x22   : > { %p523_p2 = pnand %p522_p1, %p516_p7 }
  0x24   : > { %526 = shalt.err (!%p523_p2)
}
  0x25   : > { %s527_s20 = scalar_lea.vmem %s756_s4, 128  ;;  %s660_s28 = smov [#allocation5]  }
  0x26   : > { %p528_p3 = scmp.ne.s32.totalorder %s756_s4, %s527_s20  ;;  %s532_s29 = sshll.u32 %s660_s28, 4  ;;  %s533_s29 = int_to_ptr.vmem [resolvable:$false] %s532_s29 }
  0x27   : > { %s534_s3 = scalar_lea.vmem %s533_s29, 256  ;;  %p535_p9 = scmp.lt.s32.totalorder %s756_s4, %s533_s29 }
  0x28   : > { %p530_p6 = pnand %p528_p3, %p514_p5  ;;  %p536_p4 = scmp.lt.s32.totalorder %s534_s3, %s527_s20 }
  0x2a   : > { %p531_p11 = pneg %p530_p6  ;;  %p537_p10 = por %p536_p4, %p535_p9 }
  0x2c   : > { %p538_p12 = pnand %p537_p10, %p531_p11 }
  0x2e   : > { %541 = shalt.err (!%p538_p12)
}
  0x2f   : > { %454 = dma.hbm_to_vmem [thread:$0]  (!%p760_p0), %s752_s30, 128, %s756_s4, %s134_s6  }
  0x30   : > { %p914_p1 = scmp.lt.s32.totalorder %s658_s14, 3  ;;  %p915_p2 = scmp.ge.s32.totalorder %s658_s14, 1 }
  0x31   : > { %s805_s16 = scalar_lea.hbm %s905_s1, %s426_s27  ;;  %s156_s18 = scalar_lea.vmem [#allocation8], %s425_s26 }
  0x32   : > { %p796_p7 = pnand %p915_p2, %p914_p1  ;;  %s164_s19 = sshll.u32 %s156_s18, 4  ;;  %s165_s19 = int_to_ptr.vmem [resolvable:$true] %s164_s19 }
  0x33   : > { %s153_s30 = scalar_lea.sflag [#allocation9], %s743_s25  ;;  %s542_s4 = scalar_lea.hbm %s805_s16, 128 }
  0x34   : > { %s916_s7 = scalar_select %p796_p7, 1, 0 }
  0x35   : > { %p543_p9 = scmp.ne.s32.totalorder %s805_s16, %s542_s4  ;;  %s547_s27 = scalar_lea.hbm %s905_s1, 256 }
  0x36   : > { %p548_p3 = scmp.lt.u32.totalorder %s805_s16, %s905_s1  ;;  %p549_p6 = scmp.lt.u32.totalorder %s547_s27, %s542_s4 }
  0x37   : > { %p545_p11 = pnand %p543_p9, %p514_p5  ;;  %p551_p10 = scmp.lt.u32.totalorder %s542_s4, %s805_s16 }
  0x38   : > { %p550_p4 = por %p549_p6, %p548_p3 }
  0x39   : > { %p546_p13 = pneg %p545_p11 }
  0x3a   : > { %p552_p12 = por %p551_p10, %p550_p4 }
  0x3c   : > { %p553_p1 = pnand %p552_p12, %p546_p13 }
  0x3e   : > { %556 = shalt.err (!%p553_p1)
}
  0x3f   : > { %s557_s25 = scalar_lea.vmem %s165_s19, 128  ;;  %s661_s26 = smov [#allocation8]  }
  0x40   : > { %p558_p2 = scmp.ne.s32.totalorder %s165_s19, %s557_s25  ;;  %s562_s3 = sshll.u32 %s661_s26, 4  ;;  %s563_s3 = int_to_ptr.vmem [resolvable:$false] %s562_s3 }
  0x41   : > { %s564_s8 = scalar_lea.vmem %s563_s3, 256  ;;  %p565_p8 = scmp.lt.s32.totalorder %s165_s19, %s563_s3 }
  0x42   : > { %p560_p9 = pnand %p558_p2, %p514_p5  ;;  %p566_p7 = scmp.lt.s32.totalorder %s564_s8, %s557_s25 }
  0x44   : > { %p561_p11 = pneg %p560_p9  ;;  %p567_p3 = por %p566_p7, %p565_p8 }
  0x46   : > { %p568_p6 = pnand %p567_p3, %p561_p11 }
  0x48   : > { %571 = shalt.err (!%p568_p6)
}
  0x49   : > { %457 = dma.hbm_to_vmem [thread:$0]  (!%p760_p0), %s805_s16, 128, %s165_s19, %s153_s30  }
  0x4a   : > { %p917_p13 = scmp.ne.s32.totalorder %s916_s7, 0 }
  0x4b   : > { %s832_s15 = sand.u32 (!%p917_p13), 1, %s642_s10   ;;  %p918_p8 = scmp.ne.s32.totalorder (!%p917_p13), %s910_s21, 0 }
  0x4c   : > { %173 = sbr.rel (%p917_p13) target bundleno = 325 (0x145), region = 28  ;;  %s835_s18 = sshll.u32 (!%p917_p13), %s832_s15, 3 }
  0x4d   : > { %s176_s4 = scalar_lea.sflag (!%p917_p13), [#allocation6], %s832_s15  ;;  %s179_s6 = scalar_lea.vmem (!%p917_p13), [#allocation5], %s835_s18 }
  0x53   : > { %625 = dma.done.wait (%p918_p8), %s176_s4, 128  }
  0x54   : > { %627 = vsyncadd (%p918_p8), %s176_s4, 4294967168  ;;  %s185_s5 = scalar_lea.sflag [#allocation9], %s832_s15  ;;  %s188_s7 = scalar_lea.vmem [#allocation8], %s835_s18 }
  0x55   : > { %629 = dma.done.wait (%p918_p8), %s185_s5, 128  }
  0x56   : > { %631 = vsyncadd (%p918_p8), %s185_s5, 4294967168  ;;  %v231_v0 = vlaneseq  ;;  %s434_s16 = sshll.u32 %s650_s12, 3  ;;  %v223_v6 = vld [vmem:[%s179_s6] sm:$0xff]  ;;  %v224_v7 = vld [vmem:[%s188_s7] sm:$0xff]  ;;  %s436_s30 = sshll.u32 %s650_s12, 7 }
  0x57   : > { %v237_v1 = vstv %s434_s16  ;;  %v225_v8 = vsub.f32 %v224_v7, %v223_v6  ;;  %v228_v10 = vand.u32 2147483647, %v224_v7  ;;  %s213_s27 = scalar_lea.vmem [#allocation10], %s835_s18  ;;  %s855_s26 = scalar_lea.hbm %s906_s2, %s436_s30 }
  0x58   : > { %v232_v2 = vshrl.u32 %v231_v0, 7  ;;  %v234_v3 = vand.u32 127, %v231_v0  ;;  %s318_s28 = sshll.u32 %s213_s27, 4  ;;  %s305_s12 = scalar_lea.sflag [#allocation7], %s832_s15  ;;  %s857_s28 = int_to_ptr.vmem [resolvable:$true] %s318_s28 }
  0x59   : > { %v226_v11 = vmul.f32 %v225_v8, %v225_v8  ;;  %v433_v12 = vadd.f32 -0.1, %v228_v10  ;;  %v227_v13 = vand.u32 2147483647, %v225_v8  ;;  %s572_s3 = scalar_lea.vmem %s857_s28, 128  ;;  %p919_p5 = scmp.ne.s32.totalorder %s911_s22, 0 }
  0x5a   : > { %v238_v4 = vadd.s32 %v237_v1, %v232_v2  ;;  %vm290_vm1 = vcmp.eq.s32.totalorder %v232_v2, 0  ;;  %vm295_vm2 = vcmp.eq.s32.totalorder %v234_v3, 2  ;;  %vm293_vm3 = vcmp.eq.s32.totalorder %v234_v3, 1  ;;  %p573_p0 = scmp.ne.s32.totalorder %s857_s28, %s572_s3  ;;  %s662_s8 = smov [#allocation10]  }
  0x5b   : > { %v230_v15 = vmax.f32 %v433_v12, 0.0  ;;  %vm291_vm4 = vcmp.eq.s32.totalorder %v234_v3, 0  ;;  %vm296_vm5 = vmand %vm290_vm1, %vm295_vm2  ;;  %s576_s18 = sshll.u32 %s662_s8, 4  ;;  %s577_s18 = int_to_ptr.vmem [resolvable:$false] %s576_s18 }
  0x5c   : > { %v239_v5 = vmul.u32 128, %v238_v4  ;;  %vm294_vm6 = vmand %vm290_vm1, %vm293_vm3  ;;  %p574_p7 = pnand %p573_p0, %p919_p5  ;;  %s578_s4 = scalar_lea.vmem %s577_s18, 256 }
  0x5d   : > { %vm292_vm7 = vmand %vm290_vm1, %vm291_vm4  ;;  %p579_p10 = scmp.lt.s32.totalorder %s857_s28, %s577_s18  ;;  %p580_p12 = scmp.lt.s32.totalorder %s578_s4, %s572_s3 }
  0x5e   : > { %v240_v9 = vadd.s32 %v239_v5, %v234_v3  ;;  %p575_p4 = pneg %p574_p7 }
  0x5f   : > { %p581_p1 = por %p580_p12, %p579_p10 }
  0x60   : > { %vm241_vm0 = vcmp.lt.s32.totalorder %v240_v9, 1000 }
  0x61   : > { %v242_v14 = vsel %vm241_vm0, %v226_v11, 0.0  ;;  %v243_v16 = vsel %vm241_vm0, %v230_v15, 0.0  ;;  %p582_p2 = pnand %p581_p1, %p575_p4 }
  0x62   : > { %261 = vadd.xlane.f32.xlu0 %v242_v14  ;;  %281 = vadd.xlane.f32.xlu1 %v243_v16  ;;  %v249_v17 = vmul.f32 %v243_v16, %v227_v13 }
  0x66   : > { %271 = vadd.xlane.f32.xlu0 %v249_v17 }
  0xef   : > { %v262_v18 = vpop.xlane.xlu0 %261  ;;  %v282_v20 = vpop.xlane.xlu1 %281 }
  0xf0   : > { %v263_v19 = vrot.slane %v262_v18, 4  ;;  %v283_v22 = vrot.slane %v282_v20, 4 }
  0xf2   : > { %v264_v21 = vadd.f32 %v263_v19, %v262_v18  ;;  %v284_v25 = vadd.f32 %v283_v22, %v282_v20 }
  0xf3   : > { %v272_v23 = vpop.xlane.xlu0 %271 }
  0xf4   : > { %v265_v24 = vrot.slane %v264_v21, 2  ;;  %v273_v26 = vrot.slane %v272_v23, 4  ;;  %v285_v27 = vrot.slane %v284_v25, 2 }
  0xf6   : > { %v274_v28 = vadd.f32 %v273_v26, %v272_v23  ;;  %v266_v29 = vadd.f32 %v265_v24, %v264_v21  ;;  %v286_v30 = vadd.f32 %v285_v27, %v284_v25 }
  0xf8   : > { %v275_v31 = vrot.slane %v274_v28, 2  ;;  %v267_v32 = vrot.slane %v266_v29, 1  ;;  %v287_v35 = vrot.slane %v286_v30, 1 }
  0xfa   : > { %v276_v33 = vadd.f32 %v275_v31, %v274_v28  ;;  %v268_v34 = vadd.f32 %v267_v32, %v266_v29  ;;  %v288_v38 = vadd.f32 %v287_v35, %v286_v30 }
  0xfc   : > { %439 = vpush %v268_v34  ;;  %v277_v36 = vrot.slane %v276_v33, 1 }
  0xfe   : > { %v278_v37 = vadd.f32 %v277_v36, %v276_v33 }
 0x100   : > { %441 = vpush %v278_v37 }
 0x101   : > { %443 = vpush %v288_v38 }
 0x12d   : > { %s440_s21 = spop %439 }
 0x12e   : > { %v301_v42 = vstv %s440_s21 }
 0x131   : > { %s442_s19 = spop %441 }
 0x132   : > { %v299_v39 = vstv %s442_s19  ;;  %s444_s20 = spop %443 }
 0x133   : > { %v297_v40 = vstv %s444_s20 }
 0x134   : > { %v298_v41 = vsel %vm296_vm5, %v297_v40, 0.0 }
 0x135   : > { %v300_v43 = vsel %vm294_vm6, %v299_v39, %v298_v41 }
 0x136   : > { %v302_v44 = vsel %vm292_vm7, %v301_v42, %v300_v43 }
 0x137   : > { %303 = vst [vmem:[%s213_s27] sm:$0xff] %v302_v44 }
 0x138   : > { %585 = shalt.err (!%p582_p2)
}
 0x139   : > { %s586_s15 = scalar_lea.hbm %s855_s26, 128  ;;  %s590_s7 = scalar_lea.hbm %s906_s2, 256 }
 0x13a   : > { %p587_p9 = scmp.ne.s32.totalorder %s855_s26, %s586_s15  ;;  %p591_p6 = scmp.lt.u32.totalorder %s855_s26, %s906_s2 }
 0x13b   : > { %p592_p13 = scmp.lt.u32.totalorder %s590_s7, %s586_s15  ;;  %p594_p0 = scmp.lt.u32.totalorder %s586_s15, %s855_s26 }
 0x13c   : > { %p588_p11 = pnand %p587_p9, %p919_p5 }
 0x13d   : > { %p593_p8 = por %p592_p13, %p591_p6 }
 0x13e   : > { %p589_p3 = pneg %p588_p11 }
 0x13f   : > { %p595_p7 = por %p594_p0, %p593_p8 }
 0x141   : > { %p596_p4 = pnand %p595_p7, %p589_p3 }
 0x143   : > { %599 = shalt.err (!%p596_p4)
}
 0x144   : > { %449 = dma.vmem_to_hbm [thread:$0]  (%p919_p5), %s857_s28, 128, %s855_s26, %s305_s12  }
 0x145 PF: > { %s330_s19 = sand.u32 1, %s638_s9   ;;  %p920_p10 = scmp.ne.s32.totalorder %s912_s24, 0 }
 0x146   : > { %p921_p12 = scmp.ge.s32.totalorder %s658_s14, 2  ;;  %s331_s30 = scalar_lea.sflag [#allocation7], %s330_s19 }
 0x148   : > { %p459_p1 = pnand %p921_p12, %p920_p10 }
 0x14a   : > { %633 = dma.done.wait (!%p459_p1), %s331_s30, 128  }
 0x14b   : > { %635 = vsyncadd (!%p459_p1), %s331_s30, 4294967168  ;;  %s21_s14 = sadd.s32 1, %s658_s14   ;;  %s922_s9 = smov %s642_s10 }
 0x14c   : > { %p18_p2 = scmp.ge.s32.totalorder %s21_s14, 4   ;;  %s923_s10 = smov %s646_s11 }
 0x14d   : > { %s924_s11 = smov %s734_s23  ;;  %s925_s12 = smov %s654_s13 }
 0x14e   : > { %s926_s13 = smov %s928_s17  ;;  %20 = sbr.rel (!%p18_p2) target bundleno = 8 (0x8), region = 94 }
 0x155   :  { %336 = vsyncpa [#allocation6], 1 }
 0x156   :  { %338 = vsyncpa [#allocation6 + $0x1], 1 }
 0x157   :  { %339 = vsyncpa [#allocation9], 1 }
 0x158   :  { %341 = vsyncpa [#allocation9 + $0x1], 1 }
 0x159   :  { %342 = vsyncpa [#allocation7], 1 }
 0x15a   :  { %344 = vsyncpa [#allocation7 + $0x1], 1 }

</bundles_post_ra>
